<compile_context>
chip_gen: v6e
topology: v6e:2x2x1
jax: 0.10.0
libtpu: 0.0.40
codegen_flags: <defaults>
</compile_context>

<pallas_src>
from functools import partial
from typing import Dict, Optional, Tuple

import jax
import jax.numpy as jnp
from jax.experimental import pallas as pl
from jax.experimental.pallas import tpu as pltpu


# ---------------------------------------------------------------------------
# Kernels
# ---------------------------------------------------------------------------
def _concat_identity_kernel(*refs):
    """refs = (mod_0, ..., mod_{n-1}, out).

    Concatenation via per-modality slice stores at static lane offsets — no
    full-width temporary is built before storing.
    """
    mod_refs, o_ref = refs[:-1], refs[-1]
    off = 0
    for r in mod_refs:
        dk = r.shape[-1]
        o_ref[:, off:off + dk] = r[...].astype(o_ref.dtype)
        off += dk
    # TODO(synk): non-128-aligned modality widths lower to masked vst; padding
    # d_k (or DMA-ing HBM->HBM column windows via pl.ANY refs) would make the
    # stores lane-dense, but changes the output memory-layout contract.


def _concat_linear_kernel(num_mods, *refs):
    """refs = (mod_0..mod_{n-1}, W_slab, bias, out, cat_scratch).

    Builds the (tm, d_cat) concatenation in a VMEM scratch with cheap slice
    stores, then issues a single full-K MXU matmul against the resident W
    column slab:
        out = concat(mods) @ W[:, j_slab] + bias[j_slab]
    f32 accumulation on the MXU; bias added once per tile; down-cast on store.
    """
    mod_refs = refs[:num_mods]
    w_ref = refs[num_mods]
    b_ref = refs[num_mods + 1]
    o_ref = refs[num_mods + 2]
    cat_ref = refs[num_mods + 3]

    off = 0
    for r in mod_refs:
        dk = r.shape[-1]
        cat_ref[:, off:off + dk] = r[...].astype(cat_ref.dtype)
        off += dk

    acc = jnp.dot(cat_ref[...], w_ref[...], preferred_element_type=jnp.float32)
    o_ref[...] = (acc + b_ref[...].astype(jnp.float32)).astype(o_ref.dtype)


# ---------------------------------------------------------------------------
# Module wrapper
# ---------------------------------------------------------------------------
class ConcatFusionModule:
    """JAX/Pallas port of torchmultimodal-style ConcatFusionModule.

    projection:
        None                      -> Identity (pure concat in-kernel)
        (W, b), W:(d_cat, d_out)  -> Linear projection fused into the kernel

    cast_matmul_inputs_to:
        Optional dtype (e.g. jnp.bfloat16) for the matmul inputs; accumulation
        stays f32 and the output keeps the promoted input/weight dtype.
    """
    # TODO(synk): arbitrary (non-Linear) projection submodules are not fused;
    # only Identity and Linear(W, b) have a clean in-kernel equivalent.

    def __init__(self,
                 projection: Optional[Tuple[jnp.ndarray, jnp.ndarray]] = None,
                 cast_matmul_inputs_to=None):
        self.projection = projection
        self.cast_matmul_inputs_to = cast_matmul_inputs_to

    # -- hardware-aware budgets ---------------------------------------------
    @staticmethod
    def _vmem_budget():
        phys = 64 * 1024 * 1024  # conservative default = v7x per-TC physical
        try:
            phys = int(pltpu.get_tpu_info().vmem_capacity_bytes)
        except Exception:
            pass
        limit = int(phys * 0.75)           # ~48 MiB v7x, ~96 MiB v5e/v6e
        tile_budget = int(limit * 0.85)    # headroom for compiler scratch
        return limit, tile_budget

    @staticmethod
    def _pick_row_tile(m_rows, bytes_per_row, resident_bytes, tile_budget):
        """Largest pipeline-friendly row tile fitting the budget, while keeping
        at least 2 grid steps along M so both v7x cores get work."""
        avail = max(tile_budget - resident_bytes, 1 << 20)
        tm = avail // max(bytes_per_row, 1)
        tm = min(tm, 2048)                      # diminishing returns beyond
        tm = min(tm, -(-m_rows // 2))           # >= 2 M-steps when possible
        if tm >= 256:
            tm -= tm % 256                      # MXU/pipeline friendly
        else:
            tm = max((tm // 8) * 8, 8)          # sublane-aligned small tiles
        return int(tm)

    # -- forward --------------------------------------------------------------
    def __call__(self, embeddings: Dict[str, jnp.ndarray]) -> jnp.ndarray:
        keys = sorted(embeddings.keys())
        mods = [embeddings[k] for k in keys]

        lead_shape = mods[0].shape[:-1]
        m_rows = 1
        for d in lead_shape:
            m_rows *= d

        cat_dtype = jnp.result_type(*[m.dtype for m in mods])
        mods2d = [m.reshape(m_rows, m.shape[-1]).astype(cat_dtype) for m in mods]
        d_ks = [m.shape[-1] for m in mods2d]
        d_cat = sum(d_ks)
        itemsize = jnp.dtype(cat_dtype).itemsize
        num_mods = len(mods2d)

        vmem_limit, tile_budget = self._vmem_budget()

        # ------------------------------------------------------------------
        # Identity projection: tiled concat via per-modality slice stores.
        # ------------------------------------------------------------------
        if self.projection is None:
            bytes_per_row = 2 * d_cat * itemsize + 2 * d_cat * itemsize  # in + out, dbl-buffered
            tm = self._pick_row_tile(m_rows, bytes_per_row, 0, tile_budget)
            grid = (pl.cdiv(m_rows, tm),)
            in_specs = [pl.BlockSpec((tm, dk), lambda i: (i, 0)) for dk in d_ks]
            out2d = pl.pallas_call(
                _concat_identity_kernel,
                out_shape=jax.ShapeDtypeStruct((m_rows, d_cat), cat_dtype),
                grid=grid,
                in_specs=in_specs,
                out_specs=pl.BlockSpec((tm, d_cat), lambda i: (i, 0)),
                compiler_params=pltpu.CompilerParams(
                    dimension_semantics=("parallel",),
                    vmem_limit_bytes=vmem_limit),
                cost_estimate=pl.CostEstimate(
                    flops=0, transcendentals=0,
                    bytes_accessed=2 * m_rows * d_cat * itemsize),
            )(*mods2d)
            return out2d.reshape(*lead_shape, d_cat)

        # ------------------------------------------------------------------
        # Linear projection: out = concat(mods) @ W + b, one full-K dot / tile.
        # ------------------------------------------------------------------
        w, b = self.projection
        assert w.shape[0] == d_cat, (
            f"projection expects {w.shape[0]} in-features, got {d_cat}")
        d_out = w.shape[1]

        out_dtype = jnp.result_type(cat_dtype, w.dtype)
        compute_dtype = (jnp.dtype(self.cast_matmul_inputs_to)
                         if self.cast_matmul_inputs_to is not None
                         else jnp.dtype(out_dtype))
        w_c = w.astype(compute_dtype)
        b2d = b.reshape(1, d_out).astype(jnp.float32)

        # N (d_out) tiling: keep the whole W resident when it fits, otherwise
        # only a (d_cat, tn) column slab per grid step.
        w_itemsize = jnp.dtype(compute_dtype).itemsize
        out_itemsize = jnp.dtype(out_dtype).itemsize
        w_bytes = d_cat * d_out * w_itemsize
        if w_bytes <= tile_budget // 2 or d_out <= 128:
            tn = d_out
        else:
            tn_cap = (tile_budget // 2) // max(2 * d_cat * w_itemsize, 1)
            tn = min(max(128, (tn_cap // 128) * 128), d_out)
        n_steps = pl.cdiv(d_out, tn)
        # TODO(synk): no K (d_cat) reduction tiling; assumes a single W column
        # slab (d_cat x tn) fits in VMEM, which holds for realistic fusion dims.

        w_resident = d_cat * tn * w_itemsize * (1 if n_steps == 1 else 2)
        b_resident = tn * 4 * (1 if n_steps == 1 else 2)
        bytes_per_row = (2 * d_cat * itemsize        # modality inputs (dbl-buffered)
                         + 2 * tn * out_itemsize     # output tile (dbl-buffered)
                         + d_cat * w_itemsize)       # concat scratch (single)
        tm = self._pick_row_tile(m_rows, bytes_per_row,
                                 w_resident + b_resident, tile_budget)
        grid = (pl.cdiv(m_rows, tm), n_steps)

        def _run(single_buffer_consts: bool):
            def const_spec(shape, imap):
                if single_buffer_consts:
                    return pl.BlockSpec(shape, imap, pipeline_mode=pl.Buffered(1))
                return pl.BlockSpec(shape, imap)

            in_specs = (
                [pl.BlockSpec((tm, dk), lambda i, j: (i, 0)) for dk in d_ks]
                + [const_spec((d_cat, tn), lambda i, j: (0, j)),
                   const_spec((1, tn), lambda i, j: (0, j))]
            )
            return pl.pallas_call(
                partial(_concat_linear_kernel, num_mods),
                out_shape=jax.ShapeDtypeStruct((m_rows, d_out), out_dtype),
                grid=grid,
                in_specs=in_specs,
                out_specs=pl.BlockSpec((tm, tn), lambda i, j: (i, j)),
                scratch_shapes=[pltpu.VMEM((tm, d_cat), compute_dtype)],
                compiler_params=pltpu.CompilerParams(
                    dimension_semantics=("parallel", "parallel"),
                    vmem_limit_bytes=vmem_limit),
                cost_estimate=pl.CostEstimate(
                    flops=2 * m_rows * d_cat * d_out,
                    transcendentals=0,
                    bytes_accessed=(m_rows * d_cat * itemsize
                                    + m_rows * d_out * out_itemsize
                                    + d_cat * d_out * w_itemsize
                                    + d_out * 4)),
            )(*mods2d, w_c, b2d)

        if n_steps == 1:
            # Constant-index W/bias -> single-buffer them to halve their VMEM
            # footprint; fall back to default buffering if lowering rejects it.
            try:
                out2d = _run(single_buffer_consts=True)
            except Exception:
                out2d = _run(single_buffer_consts=False)
        else:
            out2d = _run(single_buffer_consts=False)

        return out2d.reshape(*lead_shape, d_out)


# ---------------------------------------------------------------------------
# Demo / self-check
# ---------------------------------------------------------------------------
if __name__ == "__main__":
    key = jax.random.PRNGKey(0)
    k_img, k_txt, k_w, k_b, k_big1, k_big2 = jax.random.split(key, 6)

    B, S = 2, 8
    D_IMG, D_TXT, D_OUT = 32, 32, 32
    D_CAT = D_IMG + D_TXT

    embeddings = {
        "image": jax.random.normal(k_img, (B, S, D_IMG), dtype=jnp.float32),
        "text": jax.random.normal(k_txt, (B, S, D_TXT), dtype=jnp.float32),
    }

    # Deterministic projection params (synthetic nn.Linear(D_CAT, D_OUT)).
    W = jax.random.normal(k_w, (D_CAT, D_OUT), dtype=jnp.float32) * 0.05
    bias = jax.random.normal(k_b, (D_OUT,), dtype=jnp.float32) * 0.05

    # --- case 1: default projection = Identity (pure concat in-kernel) ---
    out_ident = ConcatFusionModule(projection=None)(embeddings)
    jax.block_until_ready(out_ident)
    ref_ident = jnp.concatenate(
        [embeddings[k] for k in sorted(embeddings.keys())], axis=-1)
    assert out_ident.shape == (B, S, D_CAT)
    assert jnp.allclose(out_ident, ref_ident, atol=1e-6), "identity concat mismatch"

    # --- case 2: Linear projection fused with the concat ---
    out_proj = ConcatFusionModule(projection=(W, bias))(embeddings)
    jax.block_until_ready(out_proj)
    ref_proj = ref_ident @ W + bias
    assert out_proj.shape == (B, S, D_OUT)
    assert jnp.allclose(out_proj, ref_proj, atol=1e-4, rtol=1e-4), "projection mismatch"

    # --- case 2b: optional bf16 matmul inputs (f32 accumulation) ---
    out_bf16 = ConcatFusionModule(projection=(W, bias),
                                  cast_matmul_inputs_to=jnp.bfloat16)(embeddings)
    jax.block_until_ready(out_bf16)
    assert jnp.allclose(out_bf16, ref_proj, atol=3e-2, rtol=3e-2), "bf16 projection mismatch"

    # --- case 3: exercise M-tiling / boundary masking (M > TM, M % TM != 0) ---
    B2, S2 = 4, 520  # M = 2080 -> multiple 'parallel' row tiles + partial tail
    emb_big = {
        "a": jax.random.normal(k_big1, (B2, S2, D_IMG), dtype=jnp.float32),
        "b": jax.random.normal(k_big2, (B2, S2, D_TXT), dtype=jnp.float32),
    }
    out_big = ConcatFusionModule(projection=(W, bias))(emb_big)
    jax.block_until_ready(out_big)
    ref_big_cat = jnp.concatenate(
        [emb_big[k] for k in sorted(emb_big.keys())], axis=-1)
    ref_big = ref_big_cat @ W + bias
    assert out_big.shape == (B2, S2, D_OUT)
    assert jnp.allclose(out_big, ref_big, atol=1e-4, rtol=1e-4), "tiled projection mismatch"

    out_big_id = ConcatFusionModule(projection=None)(emb_big)
    jax.block_until_ready(out_big_id)
    assert jnp.allclose(out_big_id, ref_big_cat, atol=1e-6), "tiled concat mismatch"

    print("KERNEL_OK")
</pallas_src>

<mosaic_0001>
module attributes {stable_mosaic.version = 11 : i64} {
  func.func @_concat_identity_kernel(%arg0: i32, %arg1: memref<8x32xf32, #tpu.memory_space<vmem>>, %arg2: memref<8x32xf32, #tpu.memory_space<vmem>>, %arg3: memref<8x64xf32, #tpu.memory_space<vmem>>) attributes {dimension_semantics = [#tpu.dimension_semantics<parallel>], iteration_bounds = array<i64: 2>, scalar_prefetch = 0 : i64, scratch_operands = 0 : i64, tpu.core_type = #tpu.core_type<tc>, window_params = [{transform_indices = @transform_0, window_bounds = array<i64: 8, 32>}, {transform_indices = @transform_1, window_bounds = array<i64: 8, 32>}, {transform_indices = @transform_2, window_bounds = array<i64: 8, 64>}]} {
    %c0 = arith.constant 0 : index
    %c0_0 = arith.constant 0 : index
    %0 = vector.load %arg1[%c0, %c0_0] : memref<8x32xf32, #tpu.memory_space<vmem>>, vector<8x32xf32>
    %c0_1 = arith.constant 0 : index
    %c0_2 = arith.constant 0 : index
    %1 = vector.load %arg3[%c0_1, %c0_2] : memref<8x64xf32, #tpu.memory_space<vmem>>, vector<8x32xf32>
    tpu.vector_store %arg3[%c0_1, %c0_2], %0 {strides = array<i32>} : memref<8x64xf32, #tpu.memory_space<vmem>>, vector<8x32xf32>,
    %c0_3 = arith.constant 0 : index
    %c0_4 = arith.constant 0 : index
    %2 = vector.load %arg2[%c0_3, %c0_4] : memref<8x32xf32, #tpu.memory_space<vmem>>, vector<8x32xf32>
    %c0_5 = arith.constant 0 : index
    %c32 = arith.constant 32 : index
    %3 = vector.load %arg3[%c0_5, %c32] : memref<8x64xf32, #tpu.memory_space<vmem>>, vector<8x32xf32>
    tpu.vector_store %arg3[%c0_5, %c32], %2 {strides = array<i32>} : memref<8x64xf32, #tpu.memory_space<vmem>>, vector<8x32xf32>,
    return
  }
  func.func @transform_0(%arg0: i32) -> (i32, i32) {
    %c0_i32 = arith.constant 0 : i32
    %c0_i32_0 = arith.constant 0 : i32
    return %arg0, %c0_i32 : i32, i32
  }
  func.func @transform_1(%arg0: i32) -> (i32, i32) {
    %c0_i32 = arith.constant 0 : i32
    %c0_i32_0 = arith.constant 0 : i32
    return %arg0, %c0_i32 : i32, i32
  }
  func.func @transform_2(%arg0: i32) -> (i32, i32) {
    %c0_i32 = arith.constant 0 : i32
    %c0_i32_0 = arith.constant 0 : i32
    return %arg0, %c0_i32 : i32, i32
  }
}

</mosaic_0001>

<bundles_post_ra>
// kernel: tpu_custom_call.1
= control target key start
LH: loop header
LB: loop body
LE: loop exit
PB: predicated region body
PF: predicated region fallthrough
CT: control target
= control target key end

     0   :  { %7 = vsyncpa [#allocation3], 0  ;;  %s725_s0 = inlined_call_operand.hbm [shape: f32[16,32], index: 0, kind: input, shape index: {}]   ;;  %s726_s1 = inlined_call_operand.hbm [shape: f32[16,32], index: 1, kind: input, shape index: {}]   ;;  %s727_s2 = inlined_call_operand.hbm [shape: f32[16,64], index: 2, kind: output, shape index: {}]  }
   0x1   :  { %9 = vsyncpa [#allocation3 + $0x1], 0 }
   0x2   :  { %10 = vsyncpa [#allocation6], 0 }
   0x3   :  { %12 = vsyncpa [#allocation6 + $0x1], 0 }
   0x4   :  { %13 = vsyncpa [#allocation4], 0 }
   0x5   :  { %15 = vsyncpa [#allocation4 + $0x1], 0  ;;  %s525_s9 = smov 0   ;;  %s527_s10 = smov 0  }
   0x6   :  { %s529_s11 = smov 0   ;;  %s531_s12 = smov 0  }
   0x7 LB: > { %s546_s13 = sadd.s32 4294967295, %s504_s12   ;;  %s313_s14 = sadd.s32 4294967294, %s504_s12   ;;  %s504_s12 = sphi %s531_s12, %s746_s12   ;;  %s500_s11 = sphi %s529_s11, %s745_s11   ;;  %s496_s10 = sphi %s527_s10, %s744_s10   ;;  %s492_s9 = sphi %s525_s9, %s743_s9  }
   0x8   : > { %s550_s15 = sadd.s32 1, %s504_s12   ;;  %s28_s16 = sadd.s32 1, %s500_s11 }
   0x9   : > { %s25_s17 = ssub.s32 %s504_s12, %s550_s15  ;;  %p35_p0 = scmp.ne.s32.totalorder %s500_s11, %s496_s10 }
   0xa   : > { %p26_p1 = scmp.eq.s32.totalorder %s25_s17, 0  ;;  %p36_p2 = scmp.eq.s32.totalorder %s504_s12, 0 }
   0xb   : > { %p41_p3 = scmp.ne.s32.totalorder %s496_s10, %s492_s9  ;;  %p42_p4 = scmp.eq.s32.totalorder %s546_s13, 0 }
   0xc   : > { %s562_s18 = scalar_select %p26_p1, %s500_s11, %s28_s16  }
   0xd   : > { %p564_p5 = por %p36_p2, %p35_p0  ;;  %p568_p6 = por %p42_p4, %p41_p3 }
   0xe   : > { %p91_p7 = scmp.eq.s32.totalorder %s546_s13, 1  ;;  %p97_p8 = scmp.eq.s32.totalorder %s313_s14, 1 }
   0xf   : > { %s731_s20 = scalar_select %p568_p6, 1, 0 }
  0x10   : > { %p345_p10 = scmp.lt.s32.totalorder %s504_s12, 2  ;;  %p575_p11 = por %p91_p7, %p35_p0 }
  0x11   : > { %p579_p12 = por %p97_p8, %p41_p3  ;;  %s584_s23 = sand.u32 1, %s500_s11  }
  0x12   : > { %s732_s21 = scalar_select %p575_p11, 1, 0 }
  0x13   : > { %s733_s22 = scalar_select %p579_p12, 1, 0 }
  0x14   : > { %s317_s24 = sshll.u32 %s504_s12, 7  ;;  %s316_s25 = sshll.u32 %s584_s23, 3 }
  0x15   : > { %s593_s28 = scalar_lea.hbm %s725_s0, %s317_s24  ;;  %s121_s29 = scalar_lea.vmem [#allocation2], %s316_s25 }
  0x16   : > { %s128_s30 = sshll.u32 %s121_s29, 4  ;;  %p599_p13 = pnand %p345_p10, %p564_p5  ;;  %s603_s30 = int_to_ptr.vmem [resolvable:$true] %s128_s30 }
  0x17   : > { %s118_s4 = scalar_lea.sflag [#allocation3], %s584_s23  ;;  %s380_s5 = scalar_lea.hbm %s593_s28, 128 }
  0x18   : > { %p381_p2 = scmp.ne.s32.totalorder %s593_s28, %s380_s5  ;;  %p382_p3 = pneg %p599_p13 }
  0x19   : > { %s385_s8 = scalar_lea.hbm %s725_s0, 256  ;;  %p386_p5 = scmp.lt.s32.totalorder %s593_s28, %s725_s0 }
  0x1a   : > { %p383_p4 = pnand %p382_p3, %p381_p2  ;;  %p387_p8 = scmp.lt.s32.totalorder %s385_s8, %s380_s5 }
  0x1c   : > { %p384_p7 = pneg %p383_p4  ;;  %p388_p10 = por %p387_p8, %p386_p5 }
  0x1e   : > { %p389_p9 = pnand %p388_p10, %p384_p7 }
  0x20   : > { %392 = shalt.err (!%p389_p9)
}
  0x21   : > { %s393_s17 = scalar_lea.vmem %s603_s30, 128  ;;  %s506_s19 = smov [#allocation2]  }
  0x22   : > { %p394_p0 = scmp.ne.s32.totalorder %s603_s30, %s393_s17  ;;  %s398_s26 = sshll.u32 %s506_s19, 4  ;;  %s399_s26 = int_to_ptr.vmem [resolvable:$false] %s398_s26 }
  0x23   : > { %s400_s27 = scalar_lea.vmem %s399_s26, 256  ;;  %p401_p1 = scmp.lt.s32.totalorder %s603_s30, %s399_s26 }
  0x24   : > { %p396_p2 = pnand %p394_p0, %p382_p3  ;;  %p402_p12 = scmp.lt.s32.totalorder %s400_s27, %s393_s17 }
  0x26   : > { %p397_p4 = pneg %p396_p2  ;;  %p403_p11 = por %p402_p12, %p401_p1 }
  0x28   : > { %p404_p5 = pnand %p403_p11, %p397_p4 }
  0x2a   : > { %407 = shalt.err (!%p404_p5)
}
  0x2b   : > { %337 = dma.hbm_to_vmem [thread:$0]  (!%p599_p13), %s593_s28, 128, %s603_s30, %s118_s4  }
  0x2c   : > { %p735_p9 = scmp.lt.s32.totalorder %s504_s12, 3  ;;  %p736_p0 = scmp.ge.s32.totalorder %s504_s12, 1 }
  0x2d   : > { %s645_s7 = scalar_lea.hbm %s726_s1, %s317_s24  ;;  %s139_s8 = scalar_lea.vmem [#allocation5], %s316_s25 }
  0x2e   : > { %p636_p7 = pnand %p736_p0, %p735_p9  ;;  %s146_s14 = sshll.u32 %s139_s8, 4  ;;  %s147_s14 = int_to_ptr.vmem [resolvable:$true] %s146_s14 }
  0x2f   : > { %s136_s28 = scalar_lea.sflag [#allocation6], %s584_s23  ;;  %s408_s30 = scalar_lea.hbm %s645_s7, 128 }
  0x30   : > { %s737_s29 = scalar_select %p636_p7, 1, 0 }
  0x31   : > { %p409_p11 = scmp.ne.s32.totalorder %s645_s7, %s408_s30  ;;  %s413_s17 = scalar_lea.hbm %s726_s1, 256 }
  0x32   : > { %p414_p8 = scmp.lt.s32.totalorder %s645_s7, %s726_s1  ;;  %p415_p10 = scmp.lt.s32.totalorder %s413_s17, %s408_s30 }
  0x33   : > { %p411_p12 = pnand %p409_p11, %p382_p3 }
  0x34   : > { %p416_p2 = por %p415_p10, %p414_p8 }
  0x35   : > { %p412_p1 = pneg %p411_p12 }
  0x37   : > { %p417_p4 = pnand %p416_p2, %p412_p1 }
  0x39   : > { %420 = shalt.err (!%p417_p4)
}
  0x3a   : > { %s421_s25 = scalar_lea.vmem %s147_s14, 128  ;;  %s507_s23 = smov [#allocation5]  }
  0x3b   : > { %p422_p5 = scmp.ne.s32.totalorder %s147_s14, %s421_s25  ;;  %s426_s26 = sshll.u32 %s507_s23, 4  ;;  %s427_s26 = int_to_ptr.vmem [resolvable:$false] %s426_s26 }
  0x3c   : > { %s428_s27 = scalar_lea.vmem %s427_s26, 256  ;;  %p429_p11 = scmp.lt.s32.totalorder %s147_s14, %s427_s26 }
  0x3d   : > { %p424_p9 = pnand %p422_p5, %p382_p3  ;;  %p430_p12 = scmp.lt.s32.totalorder %s428_s27, %s421_s25 }
  0x3f   : > { %p425_p0 = pneg %p424_p9  ;;  %p431_p6 = por %p430_p12, %p429_p11 }
  0x41   : > { %p432_p7 = pnand %p431_p6, %p425_p0 }
  0x43   : > { %435 = shalt.err (!%p432_p7)
}
  0x44   : > { %340 = dma.hbm_to_vmem [thread:$0]  (!%p599_p13), %s645_s7, 128, %s147_s14, %s136_s28  }
  0x45   : > { %p738_p1 = scmp.ne.s32.totalorder %s737_s29, 0 }
  0x46   : > { %s671_s5 = sand.u32 (!%p738_p1), 1, %s496_s10   ;;  %p739_p3 = scmp.ne.s32.totalorder (!%p738_p1), %s731_s20, 0 }
  0x47   : > { %155 = sbr.rel (%p738_p1) target bundleno = 208 (0xd0), region = 28  ;;  %s321_s6 = sshll.u32 (!%p738_p1), %s671_s5, 3 }
  0x48   : > { %s158_s8 = scalar_lea.sflag (!%p738_p1), [#allocation3], %s671_s5  ;;  %s161_s30 = scalar_lea.vmem (!%p738_p1), [#allocation2], %s321_s6 }
  0x4c   : > { %479 = dma.done.wait (%p739_p3), %s158_s8, 128  }
  0x4d   : > { %481 = vsyncadd (%p739_p3), %s158_s8, 4294967168  ;;  %s167_s3 = scalar_lea.sflag [#allocation6], %s671_s5  ;;  %s170_s7 = scalar_lea.vmem [#allocation5], %s321_s6 }
  0x4e   : > { %483 = dma.done.wait (%p739_p3), %s167_s3, 128  }
  0x4f   : > { %485 = vsyncadd (%p739_p3), %s167_s3, 4294967168  ;;  %vm197_vm0 = vcmask 261120   ;;  %v196_v0 = vld [vmem:[%s161_s30] sm:$0xff]  ;;  %v199_v1 = vld [vmem:[%s170_s7] sm:$0xff]  ;;  %s195_s29 = scalar_lea.vmem [#allocation7], %s321_s6  ;;  %s508_s14 = smov 32  }
  0x50   : > { %198 = vst.msk [vmem:[%s195_s29] sm:$0xff] %vm197_vm0, %v196_v0  ;;  %201 = vrot.lane.b32.xlu0 %v199_v1, %s508_s14  ;;  %s325_s28 = sshll.u32 %s546_s13, 7  ;;  %s220_s4 = sshll.u32 %s195_s29, 4  ;;  %vm204_vm1 = vcmask 523520   ;;  %s221_s4 = int_to_ptr.vmem [resolvable:$true] %s220_s4 }
  0x51   : > { %s688_s24 = scalar_lea.hbm %s727_s2, %s325_s28  ;;  %s207_s20 = scalar_lea.sflag [#allocation4], %s671_s5 }
  0x52   : > { %s436_s19 = scalar_lea.vmem %s221_s4, 128  ;;  %p740_p13 = scmp.ne.s32.totalorder %s732_s21, 0 }
  0x53   : > { %p437_p6 = scmp.ne.s32.totalorder %s221_s4, %s436_s19  ;;  %s509_s25 = smov [#allocation7]  }
  0x54   : > { %s440_s23 = sshll.u32 %s509_s25, 4  ;;  %s441_s23 = int_to_ptr.vmem [resolvable:$false] %s440_s23 }
  0x55   : > { %p438_p7 = pnand %p437_p6, %p740_p13  ;;  %s442_s13 = scalar_lea.vmem %s441_s23, 256 }
  0x56   : > { %p443_p10 = scmp.lt.s32.totalorder %s221_s4, %s441_s23  ;;  %p444_p2 = scmp.lt.s32.totalorder %s442_s13, %s436_s19 }
  0x57   : > { %p439_p8 = pneg %p438_p7 }
  0x58   : > { %p445_p4 = por %p444_p2, %p443_p10 }
  0x5a   : > { %p446_p5 = pnand %p445_p4, %p439_p8 }
  0xc2   : > { %v202_v2 = vpop.permute.xlu0 %201 }
  0xc3   : > { %205 = vst.msk [vmem:[%s195_s29] sm:$0xff] %vm204_vm1, %v202_v2 }
  0xc4   : > { %449 = shalt.err (!%p446_p5)
}
  0xc5   : > { %s450_s26 = scalar_lea.hbm %s688_s24, 128  ;;  %s454_s6 = scalar_lea.hbm %s727_s2, 256 }
  0xc6   : > { %p451_p9 = scmp.ne.s32.totalorder %s688_s24, %s450_s26  ;;  %p455_p12 = scmp.lt.s32.totalorder %s688_s24, %s727_s2 }
  0xc7   : > { %p456_p1 = scmp.lt.s32.totalorder %s454_s6, %s450_s26 }
  0xc8   : > { %p452_p0 = pnand %p451_p9, %p740_p13 }
  0xc9   : > { %p457_p3 = por %p456_p1, %p455_p12 }
  0xca   : > { %p453_p11 = pneg %p452_p0 }
  0xcc   : > { %p458_p6 = pnand %p457_p3, %p453_p11 }
  0xce   : > { %461 = shalt.err (!%p458_p6)
}
  0xcf   : > { %332 = dma.vmem_to_hbm [thread:$0]  (%p740_p13), %s221_s4, 128, %s688_s24, %s207_s20  }
  0xd0 PF: > { %s232_s3 = sand.u32 1, %s492_s9   ;;  %p741_p7 = scmp.ne.s32.totalorder %s733_s22, 0 }
  0xd1   : > { %p742_p8 = scmp.ge.s32.totalorder %s504_s12, 2  ;;  %s233_s7 = scalar_lea.sflag [#allocation4], %s232_s3 }
  0xd3   : > { %p342_p10 = pnand %p742_p8, %p741_p7 }
  0xd5   : > { %p343_p2 = pneg %p342_p10 }
  0xd7   : > { %487 = dma.done.wait (%p343_p2), %s233_s7, 128  }
  0xd8   : > { %489 = vsyncadd (%p343_p2), %s233_s7, 4294967168  ;;  %p18_p4 = scmp.ge.s32.totalorder %s550_s15, 4   ;;  %s743_s9 = smov %s496_s10 }
  0xd9   : > { %s744_s10 = smov %s500_s11  ;;  %s745_s11 = smov %s562_s18 }
  0xda   : > { %s746_s12 = smov %s550_s15  ;;  %20 = sbr.rel (!%p18_p4) target bundleno = 7 (0x7), region = 86 }
  0xdf   :  { %238 = vsyncpa [#allocation3], 1 }
  0xe0   :  { %240 = vsyncpa [#allocation3 + $0x1], 1 }
  0xe1   :  { %241 = vsyncpa [#allocation6], 1 }
  0xe2   :  { %243 = vsyncpa [#allocation6 + $0x1], 1 }
  0xe3   :  { %244 = vsyncpa [#allocation4], 1 }
  0xe4   :  { %246 = vsyncpa [#allocation4 + $0x1], 1 }

</bundles_post_ra>
